<compile_context>
chip_gen: v6e
topology: v6e:2x2x1
jax: 0.10.0
libtpu: 0.0.40
codegen_flags: <defaults>
</compile_context>

<pallas_src>
import math

import jax
import jax.numpy as jnp
import numpy as np
from jax import lax
from jax.experimental import pallas as pl
from jax.experimental.pallas import tpu as pltpu


_SLAB = 256           # rows per scr-build slab inside the kernel
_BAND_ALIGN = 16      # sublane alignment of banded-Wh slices (bf16 packing)


# --------------------------- host-side matrix prep ---------------------------

def _interp_matrix(out_size, in_size, pad_to):
    """Bilinear (align_corners=False) interpolation matrix, shape (pad_to, in_size).

    Rows i < out_size hold the two bilinear taps for output row i; rows >= out_size
    are zero (they produce the zero padding of batch_images).
    """
    w = np.zeros((pad_to, in_size), dtype=np.float64)
    if out_size > 0:
        scale = in_size / out_size
        i = np.arange(out_size, dtype=np.int64)
        src = (i.astype(np.float64) + 0.5) * scale - 0.5
        src = np.maximum(src, 0.0)
        i0 = np.minimum(np.floor(src).astype(np.int64), in_size - 1)
        frac = src - i0
        i1 = np.minimum(i0 + 1, in_size - 1)
        np.add.at(w, (i, i0), 1.0 - frac)
        np.add.at(w, (i, i1), frac)
    return w


def _pick_row_tile(total, target=256, quantum=16):
    """Largest divisor of `total` that is a multiple of `quantum` and <= `target`."""
    target = max(int(target), quantum)
    best = None
    cand = quantum
    limit = min(total, target)
    while cand <= limit:
        if total % cand == 0:
            best = cand
        cand += quantum
    return best if best is not None else total


def _band_plan(wh64, th, in_h):
    """Banded layout of the row-interpolation matrix.

    Returns (band_start[int32, n_tiles], band_h, scr_rows, wh_band[n_tiles, th, band_h])
    or None when banding would not reduce the H contraction meaningfully.
    Band starts are multiples of _BAND_ALIGN; the source-row axis is virtually
    padded to scr_rows = align_up(in_h) so clamped bands stay aligned (the padded
    scr rows are zeroed in-kernel, the padded Wh columns are zero).
    """
    h_pad = wh64.shape[0]
    n_tiles = h_pad // th
    if n_tiles < 2:
        return None
    g = _BAND_ALIGN
    scr_rows = g * int(math.ceil(in_h / g))
    raw_start = np.zeros((n_tiles,), np.int64)
    need = np.ones((n_tiles,), np.int64)
    for i in range(n_tiles):
        rows = wh64[i * th:(i + 1) * th]
        nz = np.nonzero(np.any(rows != 0.0, axis=0))[0]
        if nz.size == 0:
            continue
        cmin, cmax = int(nz[0]), int(nz[-1])
        raw_start[i] = g * (cmin // g)
        need[i] = cmax - raw_start[i] + 1
    band_h = int(g * math.ceil(int(need.max()) / g))
    # only worth it if the band is meaningfully narrower than the full K dim
    if band_h >= in_h or 4 * band_h > 3 * in_h:
        return None
    band_start = np.minimum(raw_start, scr_rows - band_h).astype(np.int32)
    wh_cols_padded = np.zeros((h_pad, scr_rows), np.float64)
    wh_cols_padded[:, :in_h] = wh64
    wh_band = np.zeros((n_tiles, th, band_h), np.float64)
    for i in range(n_tiles):
        s = int(band_start[i])
        wh_band[i] = wh_cols_padded[i * th:(i + 1) * th, s:s + band_h]
    return band_start, band_h, scr_rows, wh_band


def _plan_shape(H, W, h_out, w_out, h_pad, w_pad, row_tile_target=256):
    """Static plan (tiling, matmul order, banding, matrices) for one source shape."""
    th = _pick_row_tile(h_pad, target=row_tile_target)
    n_tiles = h_pad // th
    wh64 = _interp_matrix(h_out, H, h_pad)        # (h_pad, H)
    wwt64 = _interp_matrix(w_out, W, w_pad).T     # (W, w_pad)
    band = _band_plan(wh64, th, H)
    if band is not None:
        band_start, band_h, scr_rows, wh_band64 = band
        banded = True
        eff_k = band_h
    else:
        band_start, band_h, scr_rows, wh_band64 = None, H, H, None
        banded = False
        eff_k = H
    # static MAC counts with the (possibly banded) H contraction folded in
    cost_rows_first = h_pad * eff_k * W + h_pad * W * w_pad
    cost_cols_first = H * W * w_pad + h_pad * eff_k * w_pad
    wh_first = cost_rows_first <= cost_cols_first
    return dict(H=H, W=W, h_pad=h_pad, w_pad=w_pad, th=th, n_tiles=n_tiles,
                wh_first=wh_first, banded=banded, band_start=band_start,
                band_h=band_h, scr_rows=scr_rows,
                wh64=wh64, wwt64=wwt64, wh_band64=wh_band64)


# --------------------------------- kernel -----------------------------------

def _make_kernel(*, wh_first, banded, th, in_h, pad_rows):
    """normalize + separable bilinear resize (+ zero pad) for one output row tile.

    Grid: (image-in-bucket, channel, output-row-tile).  The plane-wide intermediate
    shared by all row tiles of one (image, channel) lives in a bf16 VMEM scratch and
    is built once at row-tile 0 in bounded-size slabs.
    """
    n_full = in_h // _SLAB
    rem = in_h % _SLAB

    def kernel(*refs):
        if banded:
            (mean_ref, inv_std_ref, bs_ref, img_ref, wh_ref, wwt_ref,
             out_ref, scr_ref) = refs
        else:
            (mean_ref, inv_std_ref, img_ref, wh_ref, wwt_ref,
             out_ref, scr_ref) = refs

        c = pl.program_id(1)
        i = pl.program_id(2)
        mu = mean_ref[c]
        ivs = inv_std_ref[c]

        def fill_scr(h0, rows):
            x = img_ref[pl.ds(h0, rows), :]                       # (rows, W) f32
            norm = ((x - mu) * ivs).astype(jnp.bfloat16)          # VPU, f32 math
            if wh_first:
                scr_ref[pl.ds(h0, rows), :] = norm
            else:
                scr_ref[pl.ds(h0, rows), :] = jnp.dot(
                    norm, wwt_ref[...],
                    preferred_element_type=jnp.float32).astype(jnp.bfloat16)

        @pl.when(i == 0)
        def _():
            # build the plane-wide intermediate once, in bounded-size slabs
            if n_full > 0:
                def slab_body(s, carry):
                    fill_scr(pl.multiple_of(s * _SLAB, 8), _SLAB)
                    return carry
                lax.fori_loop(0, n_full, slab_body, 0)
            if rem > 0:
                fill_scr(n_full * _SLAB, rem)
            if pad_rows > 0:
                # zero the alignment-pad rows read by clamped band windows
                scr_ref[pl.ds(in_h, pad_rows), :] = jnp.zeros(
                    (pad_rows, scr_ref.shape[1]), jnp.bfloat16)

        if banded:
            wh_tile = wh_ref[i]                                   # (th, band_h) bf16
            band_h = wh_ref.shape[-1]
            b0 = pl.multiple_of(bs_ref[i], 8)
            src = scr_ref[pl.ds(b0, band_h), :]
        else:
            row0 = pl.multiple_of(i * th, 8)
            wh_tile = wh_ref[pl.ds(row0, th), :]                  # (th, H) bf16
            src = scr_ref[...]

        if wh_first:
            tmp = jnp.dot(wh_tile, src, preferred_element_type=jnp.float32)
            out = jnp.dot(tmp.astype(jnp.bfloat16), wwt_ref[...],
                          preferred_element_type=jnp.float32)     # (th, w_pad)
        else:
            out = jnp.dot(wh_tile, src, preferred_element_type=jnp.float32)
        out_ref[...] = out.astype(out_ref.dtype)

    return kernel


# ------------------------------ pallas_call glue -----------------------------

def _vmem_cap_bytes():
    """Per-core VMEM budget: physical capacity minus fixed headroom."""
    phys = None
    try:
        info = pltpu.get_tpu_info()
        phys = int(getattr(info, "vmem_capacity_bytes", 0)) or None
    except Exception:
        phys = None
    if phys is None:
        phys = 64 * 1024 * 1024          # conservative (v7x per-TC VMEM)
    return max(32 * 1024 * 1024, phys - 8 * 1024 * 1024)


def _transform_batch(imgs, mean, inv_std, plan, out_dtype):
    """Run the kernel for a stack of same-shaped images -> (Nb, C, h_pad, w_pad)."""
    nb, C, H, W = imgs.shape
    h_pad, w_pad = plan["h_pad"], plan["w_pad"]
    th, n_tiles = plan["th"], plan["n_tiles"]
    wh_first, banded = plan["wh_first"], plan["banded"]
    scr_rows = plan["scr_rows"]
    pad_rows = scr_rows - H

    wwt = jnp.asarray(plan["wwt64"], jnp.bfloat16)                  # (W, w_pad)
    if banded:
        wh = jnp.asarray(plan["wh_band64"], jnp.bfloat16)           # (nt, th, band_h)
        band_start = jnp.asarray(plan["band_start"], jnp.int32)     # (nt,)
        band_h = plan["band_h"]
        wh_bytes = n_tiles * th * band_h * 2
    else:
        wh = jnp.asarray(plan["wh64"], jnp.bfloat16)                 # (h_pad, H)
        band_start = None
        band_h = H
        wh_bytes = h_pad * H * 2

    scr_shape = (scr_rows, W) if wh_first else (scr_rows, w_pad)
    out_item = int(np.dtype(out_dtype).itemsize)

    # ---- VMEM budgeting (generation-aware) ----
    wwt_bytes = W * w_pad * 2
    img_block = H * W * 4
    out_block = th * w_pad * out_item
    scr_bytes = scr_shape[0] * scr_shape[1] * 2
    slab = min(_SLAB, H)
    transients = 4 * slab * max(W, w_pad) * 4 + th * (W + w_pad) * 8

    def footprint(img_bufs):
        return (img_bufs * img_block + wh_bytes + wwt_bytes
                + 2 * out_block + scr_bytes + transients)

    cap = _vmem_cap_bytes()
    # keep the f32 image plane double-buffered (hides per-plane DMA) unless it
    # would blow the per-core VMEM budget (e.g. production planes on v7x)
    img_bufs = 2 if int(footprint(2) * 1.25) <= cap else 1
    vmem_limit = int(min(cap, max(32 * 1024 * 1024,
                                  int(footprint(img_bufs) * 1.5))))

    operands = [mean, inv_std]
    if banded:
        operands.append(band_start)
    operands += [imgs, wh, wwt]

    kernel = _make_kernel(wh_first=wh_first, banded=banded, th=th, in_h=H,
                          pad_rows=pad_rows if banded else 0)

    def call(single_buffer_resident):
        resident = {"pipeline_mode": pl.Buffered(1)} if single_buffer_resident else {}
        in_specs = [
            pl.BlockSpec(memory_space=pltpu.MemorySpace.SMEM),     # mean   (C,)
            pl.BlockSpec(memory_space=pltpu.MemorySpace.SMEM),     # 1/std  (C,)
        ]
        if banded:
            in_specs.append(pl.BlockSpec(memory_space=pltpu.MemorySpace.SMEM))

        if single_buffer_resident and img_bufs == 1:
            in_specs.append(pl.BlockSpec((pl.Squeezed(), pl.Squeezed(), H, W),
                                         lambda n, c, i: (n, c, 0, 0),
                                         pipeline_mode=pl.Buffered(1)))
        else:
            in_specs.append(pl.BlockSpec((pl.Squeezed(), pl.Squeezed(), H, W),
                                         lambda n, c, i: (n, c, 0, 0)))

        if banded:
            in_specs.append(pl.BlockSpec((n_tiles, th, band_h),
                                         lambda n, c, i: (0, 0, 0), **resident))
        else:
            in_specs.append(pl.BlockSpec((h_pad, H),
                                         lambda n, c, i: (0, 0), **resident))
        in_specs.append(pl.BlockSpec((W, w_pad),
                                     lambda n, c, i: (0, 0), **resident))

        return pl.pallas_call(
            kernel,
            out_shape=jax.ShapeDtypeStruct((nb, C, h_pad, w_pad), out_dtype),
            grid=(nb, C, n_tiles),
            in_specs=in_specs,
            out_specs=pl.BlockSpec((pl.Squeezed(), pl.Squeezed(), th, w_pad),
                                   lambda n, c, i: (n, c, i, 0)),
            scratch_shapes=[pltpu.VMEM(scr_shape, jnp.bfloat16)],
            compiler_params=pltpu.CompilerParams(
                dimension_semantics=("parallel", "parallel", "arbitrary"),
                vmem_limit_bytes=vmem_limit),
        )(*operands)

    try:
        return call(True)
    except Exception:
        # conservative fallback: identical kernel, default (double) buffering
        return call(False)


def _resize_boxes(boxes, original_size, new_size):
    # plain-JAX glue (mirrors resize_boxes)
    rh = jnp.float32(new_size[0]) / jnp.float32(original_size[0])
    rw = jnp.float32(new_size[1]) / jnp.float32(original_size[1])
    xmin, ymin, xmax, ymax = [boxes[:, i] for i in range(4)]
    return jnp.stack((xmin * rw, ymin * rh, xmax * rw, ymax * rh), axis=1)


class GeneralizedRCNNTransformPallas:
    """JAX/Pallas equivalent of GeneralizedRCNNTransform.forward (eval mode)."""

    def __init__(self, min_size, max_size, image_mean, image_std,
                 out_dtype=jnp.float32, row_tile_target=256):
        if not isinstance(min_size, (list, tuple)):
            min_size = (min_size,)
        self.min_size = min_size
        self.max_size = max_size
        self.image_mean = image_mean
        self.image_std = image_std
        self.out_dtype = out_dtype
        self.row_tile_target = row_tile_target

    def _output_size(self, h, w):
        # mirrors resize(): scale chosen from min/max_size, output = floor(dim*scale)
        min_s, max_s = float(min(h, w)), float(max(h, w))
        size = float(self.min_size[-1])
        scale = size / min_s
        if max_s * scale > self.max_size:
            scale = self.max_size / max_s
        return int(math.floor(h * scale)), int(math.floor(w * scale))

    def __call__(self, images, targets=None, size_divisible=32):
        # Accept a list of [C, H, W] arrays or a pre-batched [N, C, H, W] array
        # (the latter avoids a wrapper-side HBM round trip for same-shape batches).
        prebatched = hasattr(images, "ndim") and getattr(images, "ndim", 0) == 4
        if prebatched:
            n_images = images.shape[0]
            shapes = [tuple(images.shape[1:])] * n_images
        else:
            for img in images:
                if img.ndim != 3:
                    raise ValueError("images must be 3D [C, H, W] tensors")
            n_images = len(images)
            shapes = [tuple(img.shape) for img in images]

        out_sizes = [self._output_size(h, w) for (_, h, w) in shapes]
        max_h = max(h for h, _ in out_sizes)
        max_w = max(w for _, w in out_sizes)
        h_pad = int(math.ceil(max_h / size_divisible) * size_divisible)
        w_pad = int(math.ceil(max_w / size_divisible) * size_divisible)

        mean = jnp.asarray(self.image_mean, jnp.float32)
        inv_std = 1.0 / jnp.asarray(self.image_std, jnp.float32)

        # group images by source shape so one pallas_call covers the whole group
        groups = {}
        for idx, shape in enumerate(shapes):
            groups.setdefault(shape, []).append(idx)
        single_group = len(groups) == 1

        results = [None] * n_images
        out = None
        for shape, idxs in groups.items():
            C, H, W = shape
            h_out, w_out = self._output_size(H, W)
            plan = _plan_shape(H, W, h_out, w_out, h_pad, w_pad,
                               row_tile_target=self.row_tile_target)
            if prebatched:
                stacked = images
            elif len(idxs) == 1:
                stacked = images[idxs[0]][None]          # reshape, no HBM copy
            else:
                stacked = jnp.stack([images[i] for i in idxs], axis=0)
            if stacked.dtype != jnp.float32:
                stacked = stacked.astype(jnp.float32)
            out = _transform_batch(stacked, mean, inv_std, plan, self.out_dtype)
            if not single_group:
                for k, i in enumerate(idxs):
                    results[i] = out[k]

        batched = out if single_group else jnp.stack(results, axis=0)

        new_targets = None
        if targets is not None:
            new_targets = list(targets)
            for idx, ((h_out, w_out), (_, h, w)) in enumerate(zip(out_sizes, shapes)):
                if new_targets[idx] is not None:
                    t = dict(new_targets[idx])
                    t["boxes"] = _resize_boxes(t["boxes"], (h, w), (h_out, w_out))
                    new_targets[idx] = t

        image_sizes = [(h, w) for h, w in out_sizes]     # ImageList.image_sizes
        return (batched, image_sizes), new_targets


# ------------------------- pure-JAX references for testing -------------------------

def _reference_f32(img, mean, std, wh, wwt):
    norm = (img - mean[:, None, None]) / std[:, None, None]
    return jnp.einsum("Hh,chw,wW->cHW", wh, norm, wwt)


def _reference_bf16(img, mean, inv_std, wh_bf16, wwt_bf16, wh_first):
    """Mirrors the kernel's bf16-input / f32-accumulation math."""
    norm = ((img - mean[:, None, None]) * inv_std[:, None, None]).astype(jnp.bfloat16)
    if wh_first:
        tmp = jnp.einsum("Hh,chw->cHw", wh_bf16, norm,
                         preferred_element_type=jnp.float32).astype(jnp.bfloat16)
        return jnp.einsum("cHw,wW->cHW", tmp, wwt_bf16,
                          preferred_element_type=jnp.float32)
    t = jnp.einsum("chw,wW->chW", norm, wwt_bf16,
                   preferred_element_type=jnp.float32).astype(jnp.bfloat16)
    return jnp.einsum("Hh,chW->cHW", wh_bf16, t,
                      preferred_element_type=jnp.float32)


if __name__ == "__main__":
    key = jax.random.PRNGKey(0)
    k1, k2, k3, k4 = jax.random.split(key, 4)
    img1 = jax.random.uniform(k1, (3, 16, 16), jnp.float32)
    img2 = jax.random.uniform(k2, (3, 16, 24), jnp.float32)

    mean_l = [0.485, 0.456, 0.406]
    std_l = [0.229, 0.224, 0.225]

    transform = GeneralizedRCNNTransformPallas(32, 64, mean_l, std_l)

    boxes1 = jnp.asarray([[0.0, 0.0, 8.0, 8.0], [2.0, 3.0, 10.0, 12.0]], jnp.float32)
    targets = [{"boxes": boxes1}, None]

    (batched, image_sizes), new_targets = transform([img1, img2], targets)
    batched = jax.block_until_ready(batched)

    assert batched.shape == (2, 3, 32, 64), batched.shape
    assert image_sizes == [(32, 32), (32, 48)], image_sizes

    mean = jnp.asarray(mean_l, jnp.float32)
    std = jnp.asarray(std_l, jnp.float32)
    inv_std = 1.0 / std
    h_pad, w_pad = 32, 64

    for b, (img, (h_out, w_out)) in enumerate(zip((img1, img2), image_sizes)):
        C, H, W = img.shape
        plan = _plan_shape(H, W, h_out, w_out, h_pad, w_pad)
        got = np.asarray(batched[b])

        # (1) structural check vs a reference with the same bf16 inputs / f32 acc
        ref_bf = np.asarray(_reference_bf16(
            img, mean, inv_std,
            jnp.asarray(plan["wh64"], jnp.bfloat16),
            jnp.asarray(plan["wwt64"], jnp.bfloat16),
            plan["wh_first"]))
        np.testing.assert_allclose(got, ref_bf, rtol=1e-3, atol=1e-3)

        # (2) accuracy check vs exact f32 math (bf16-matmul tolerance)
        ref_f32 = np.asarray(_reference_f32(
            img, mean, std,
            jnp.asarray(plan["wh64"], jnp.float32),
            jnp.asarray(plan["wwt64"], jnp.float32)))
        np.testing.assert_allclose(got, ref_f32, rtol=5e-2, atol=5e-2)

        # (3) batch_images zero padding beyond the resized extent is exact
        assert np.all(got[:, h_out:, :] == 0.0)
        assert np.all(got[:, :, w_out:] == 0.0)

    assert bool(jnp.all(jnp.isfinite(batched)))

    # box-resize glue: img1 is scaled exactly 2x in both dims
    np.testing.assert_allclose(np.asarray(new_targets[0]["boxes"]),
                               np.asarray(boxes1) * 2.0, rtol=1e-6, atol=1e-6)

    # ---- pre-batched 4D input path (no wrapper-side jnp.stack) ----
    (batched4, sizes4), _ = transform(jnp.stack([img1, img1], axis=0))
    batched4 = jax.block_until_ready(batched4)
    assert batched4.shape == (2, 3, 32, 32), batched4.shape
    assert sizes4 == [(32, 32), (32, 32)], sizes4
    np.testing.assert_allclose(np.asarray(batched4[0]),
                               np.asarray(batched[0][:, :, :32]),
                               rtol=2e-2, atol=2e-2)

    # ---- optional bf16 output path (halves output HBM traffic) ----
    t_bf16 = GeneralizedRCNNTransformPallas(32, 64, mean_l, std_l,
                                            out_dtype=jnp.bfloat16)
    (out_bf16, _), _ = t_bf16([img1])
    out_bf16 = jax.block_until_ready(out_bf16)
    assert out_bf16.dtype == jnp.bfloat16
    np.testing.assert_allclose(np.asarray(out_bf16[0].astype(jnp.float32)),
                               np.asarray(batched[0][:, :, :32]),
                               rtol=5e-2, atol=5e-2)

    # ---- banded row-interpolation path (downscale, multiple row tiles) ----
    # small shapes; row_tile_target shrunk so the banded path is exercised
    img3 = jax.random.uniform(k3, (3, 128, 64), jnp.float32)
    t_b = GeneralizedRCNNTransformPallas(32, 64, mean_l, std_l, row_tile_target=32)
    (out3, sizes3), _ = t_b([img3])
    out3 = jax.block_until_ready(out3)
    assert sizes3 == [(64, 32)], sizes3
    assert out3.shape == (1, 3, 64, 32), out3.shape
    plan3 = _plan_shape(128, 64, 64, 32, 64, 32, row_tile_target=32)
    assert plan3["banded"], "expected banded Wh contraction for img3"
    ref3 = np.asarray(_reference_f32(img3, mean, std,
                                     jnp.asarray(plan3["wh64"], jnp.float32),
                                     jnp.asarray(plan3["wwt64"], jnp.float32)))
    np.testing.assert_allclose(np.asarray(out3[0]), ref3, rtol=5e-2, atol=5e-2)

    # non-multiple-of-16 source height + zero-padded output rows + slab remainder
    img4 = jax.random.uniform(k4, (3, 300, 256), jnp.float32)
    t_c = GeneralizedRCNNTransformPallas(64, 128, mean_l, std_l, row_tile_target=32)
    (out4, sizes4b), _ = t_c([img4])
    out4 = jax.block_until_ready(out4)
    assert sizes4b == [(75, 64)], sizes4b
    assert out4.shape == (1, 3, 96, 64), out4.shape
    plan4 = _plan_shape(300, 256, 75, 64, 96, 64, row_tile_target=32)
    assert plan4["banded"], "expected banded Wh contraction for img4"
    ref4 = np.asarray(_reference_f32(img4, mean, std,
                                     jnp.asarray(plan4["wh64"], jnp.float32),
                                     jnp.asarray(plan4["wwt64"], jnp.float32)))
    got4 = np.asarray(out4[0])
    np.testing.assert_allclose(got4, ref4, rtol=5e-2, atol=5e-2)
    assert np.all(got4[:, 75:, :] == 0.0)
    assert bool(jnp.all(jnp.isfinite(out4)))

    print("KERNEL_OK")
</pallas_src>

<mosaic_0001>
module attributes {stable_mosaic.version = 11 : i64} {
  func.func @kernel(%arg0: i32, %arg1: i32, %arg2: i32, %arg3: memref<3xf32, #tpu.memory_space<smem>>, %arg4: memref<3xf32, #tpu.memory_space<smem>>, %arg5: memref<1x1x16x16xf32, #tpu.memory_space<vmem>>, %arg6: memref<32x16xbf16, #tpu.memory_space<vmem>>, %arg7: memref<16x64xbf16, #tpu.memory_space<vmem>>, %arg8: memref<1x1x32x64xf32, #tpu.memory_space<vmem>>, %arg9: memref<16x16xbf16, #tpu.memory_space<vmem>>) attributes {dimension_semantics = [#tpu.dimension_semantics<parallel>, #tpu.dimension_semantics<parallel>, #tpu.dimension_semantics<arbitrary>], iteration_bounds = array<i64: 1, 3, 1>, scalar_prefetch = 0 : i64, scratch_operands = 1 : i64, tpu.core_type = #tpu.core_type<tc>, window_params = [{transform_indices = @transform_0, window_bounds = array<i64: 3>}, {transform_indices = @transform_1, window_bounds = array<i64: 3>}, {transform_indices = @transform_2, window_bounds = array<i64: 1, 1, 16, 16>}, {pipeline_mode = #tpu.pipeline_mode<synchronous>, transform_indices = @transform_3, window_bounds = array<i64: 32, 16>}, {pipeline_mode = #tpu.pipeline_mode<synchronous>, transform_indices = @transform_4, window_bounds = array<i64: 16, 64>}, {transform_indices = @transform_5, window_bounds = array<i64: 1, 1, 32, 64>}]} {
    %0 = arith.index_cast %arg1 : i32 to index
    %1 = memref.load %arg3[%0] : memref<3xf32, #tpu.memory_space<smem>>
    %2 = arith.index_cast %arg1 : i32 to index
    %3 = memref.load %arg4[%2] : memref<3xf32, #tpu.memory_space<smem>>
    %c0_i32 = arith.constant 0 : i32
    %4 = arith.cmpi eq, %arg2, %c0_i32 : i32
    %5 = arith.extui %4 : i1 to i32
    %c0_i32_0 = arith.constant 0 : i32
    %6 = arith.cmpi ne, %5, %c0_i32_0 : i32
    scf.if %6 {
      %c0_10 = arith.constant 0 : index
      %c0_11 = arith.constant 0 : index
      %c0_12 = arith.constant 0 : index
      %c0_13 = arith.constant 0 : index
      %19 = vector.load %arg5[%c0_10, %c0_11, %c0_12, %c0_13] : memref<1x1x16x16xf32, #tpu.memory_space<vmem>>, vector<1x1x16x16xf32>
      %20 = vector.shape_cast %19 : vector<1x1x16x16xf32> to vector<16x16xf32>
      %21 = vector.broadcast %1 : f32 to vector<16x16xf32>
      %22 = arith.subf %20, %21 : vector<16x16xf32>
      %23 = vector.broadcast %3 : f32 to vector<16x16xf32>
      %24 = arith.mulf %22, %23 : vector<16x16xf32>
      %25 = arith.truncf %24 : vector<16x16xf32> to vector<16x16xbf16>
      %c0_14 = arith.constant 0 : index
      %c0_15 = arith.constant 0 : index
      %26 = vector.load %arg9[%c0_14, %c0_15] : memref<16x16xbf16, #tpu.memory_space<vmem>>, vector<16x16xbf16>
      tpu.vector_store %arg9[%c0_14, %c0_15], %25 {strides = array<i32>} : memref<16x16xbf16, #tpu.memory_space<vmem>>, vector<16x16xbf16>,
    } else {
    }
    %c32_i32 = arith.constant 32 : i32
    %7 = arith.muli %arg2, %c32_i32 : i32
    %8 = tpu.assume_multiple %7, 8 : i32
    %9 = arith.index_cast %8 : i32 to index
    %c0 = arith.constant 0 : index
    %10 = vector.load %arg6[%9, %c0] : memref<32x16xbf16, #tpu.memory_space<vmem>>, vector<32x16xbf16>
    %c0_1 = arith.constant 0 : index
    %c0_2 = arith.constant 0 : index
    %11 = vector.load %arg9[%c0_1, %c0_2] : memref<16x16xbf16, #tpu.memory_space<vmem>>, vector<16x16xbf16>
    %cst = arith.constant dense<0.000000e+00> : vector<32x16xf32>
    %12 = tpu.matmul %10, %11, %cst {dimension_numbers = #tpu.dot_dimension_numbers<[1], [0], [0], [1], [0, 0, 1, 1], [], []>} : vector<32x16xbf16>, vector<16x16xbf16>, vector<32x16xf32> -> vector<32x16xf32>
    %13 = arith.truncf %12 : vector<32x16xf32> to vector<32x16xbf16>
    %c0_3 = arith.constant 0 : index
    %c0_4 = arith.constant 0 : index
    %14 = vector.load %arg7[%c0_3, %c0_4] : memref<16x64xbf16, #tpu.memory_space<vmem>>, vector<16x64xbf16>
    %cst_5 = arith.constant dense<0.000000e+00> : vector<32x64xf32>
    %15 = tpu.matmul %13, %14, %cst_5 {dimension_numbers = #tpu.dot_dimension_numbers<[1], [0], [0], [1], [0, 0, 1, 1], [], []>} : vector<32x16xbf16>, vector<16x64xbf16>, vector<32x64xf32> -> vector<32x64xf32>
    %c0_6 = arith.constant 0 : index
    %c0_7 = arith.constant 0 : index
    %c0_8 = arith.constant 0 : index
    %c0_9 = arith.constant 0 : index
    %16 = vector.load %arg8[%c0_6, %c0_7, %c0_8, %c0_9] : memref<1x1x32x64xf32, #tpu.memory_space<vmem>>, vector<1x1x32x64xf32>
    %17 = vector.shape_cast %16 : vector<1x1x32x64xf32> to vector<32x64xf32>
    %18 = vector.shape_cast %15 : vector<32x64xf32> to vector<1x1x32x64xf32>
    tpu.vector_store %arg8[%c0_6, %c0_7, %c0_8, %c0_9], %18 {strides = array<i32>} : memref<1x1x32x64xf32, #tpu.memory_space<vmem>>, vector<1x1x32x64xf32>,
    return
  }
  func.func @transform_0(%arg0: i32, %arg1: i32, %arg2: i32) -> i32 {
    %c0_i32 = arith.constant 0 : i32
    %c0_i32_0 = arith.constant 0 : i32
    return %c0_i32 : i32
  }
  func.func @transform_1(%arg0: i32, %arg1: i32, %arg2: i32) -> i32 {
    %c0_i32 = arith.constant 0 : i32
    %c0_i32_0 = arith.constant 0 : i32
    return %c0_i32 : i32
  }
  func.func @transform_2(%arg0: i32, %arg1: i32, %arg2: i32) -> (i32, i32, i32, i32) {
    %c0_i32 = arith.constant 0 : i32
    %c0_i32_0 = arith.constant 0 : i32
    %c0_i32_1 = arith.constant 0 : i32
    return %arg0, %arg1, %c0_i32, %c0_i32_0 : i32, i32, i32, i32
  }
  func.func @transform_3(%arg0: i32, %arg1: i32, %arg2: i32) -> (i32, i32) {
    %c0_i32 = arith.constant 0 : i32
    %c0_i32_0 = arith.constant 0 : i32
    %c0_i32_1 = arith.constant 0 : i32
    return %c0_i32, %c0_i32_0 : i32, i32
  }
  func.func @transform_4(%arg0: i32, %arg1: i32, %arg2: i32) -> (i32, i32) {
    %c0_i32 = arith.constant 0 : i32
    %c0_i32_0 = arith.constant 0 : i32
    %c0_i32_1 = arith.constant 0 : i32
    return %c0_i32, %c0_i32_0 : i32, i32
  }
  func.func @transform_5(%arg0: i32, %arg1: i32, %arg2: i32) -> (i32, i32, i32, i32) {
    %c0_i32 = arith.constant 0 : i32
    %c0_i32_0 = arith.constant 0 : i32
    return %arg0, %arg1, %arg2, %c0_i32 : i32, i32, i32, i32
  }
}

module attributes {stable_mosaic.version = 11 : i64} {
  func.func @kernel(%arg0: i32, %arg1: i32, %arg2: i32, %arg3: memref<3xf32, #tpu.memory_space<smem>>, %arg4: memref<3xf32, #tpu.memory_space<smem>>, %arg5: memref<1x1x16x16xf32, #tpu.memory_space<vmem>>, %arg6: memref<32x16xbf16, #tpu.memory_space<vmem>>, %arg7: memref<16x64xbf16, #tpu.memory_space<vmem>>, %arg8: memref<1x1x32x64xf32, #tpu.memory_space<vmem>>, %arg9: memref<16x16xbf16, #tpu.memory_space<vmem>>) attributes {dimension_semantics = [#tpu.dimension_semantics<parallel>, #tpu.dimension_semantics<parallel>, #tpu.dimension_semantics<arbitrary>], iteration_bounds = array<i64: 1, 3, 1>, scalar_prefetch = 0 : i64, scratch_operands = 1 : i64, tpu.core_type = #tpu.core_type<tc>, window_params = [{transform_indices = @transform_0, window_bounds = array<i64: 3>}, {transform_indices = @transform_1, window_bounds = array<i64: 3>}, {transform_indices = @transform_2, window_bounds = array<i64: 1, 1, 16, 16>}, {pipeline_mode = #tpu.pipeline_mode<synchronous>, transform_indices = @transform_3, window_bounds = array<i64: 32, 16>}, {pipeline_mode = #tpu.pipeline_mode<synchronous>, transform_indices = @transform_4, window_bounds = array<i64: 16, 64>}, {transform_indices = @transform_5, window_bounds = array<i64: 1, 1, 32, 64>}]} {
    %0 = arith.index_cast %arg1 : i32 to index
    %1 = memref.load %arg3[%0] : memref<3xf32, #tpu.memory_space<smem>>
    %2 = arith.index_cast %arg1 : i32 to index
    %3 = memref.load %arg4[%2] : memref<3xf32, #tpu.memory_space<smem>>
    %c0_i32 = arith.constant 0 : i32
    %4 = arith.cmpi eq, %arg2, %c0_i32 : i32
    %5 = arith.extui %4 : i1 to i32
    %c0_i32_0 = arith.constant 0 : i32
    %6 = arith.cmpi ne, %5, %c0_i32_0 : i32
    scf.if %6 {
      %c0_10 = arith.constant 0 : index
      %c0_11 = arith.constant 0 : index
      %c0_12 = arith.constant 0 : index
      %c0_13 = arith.constant 0 : index
      %19 = vector.load %arg5[%c0_10, %c0_11, %c0_12, %c0_13] : memref<1x1x16x16xf32, #tpu.memory_space<vmem>>, vector<1x1x16x16xf32>
      %20 = vector.shape_cast %19 : vector<1x1x16x16xf32> to vector<16x16xf32>
      %21 = vector.broadcast %1 : f32 to vector<16x16xf32>
      %22 = arith.subf %20, %21 : vector<16x16xf32>
      %23 = vector.broadcast %3 : f32 to vector<16x16xf32>
      %24 = arith.mulf %22, %23 : vector<16x16xf32>
      %25 = arith.truncf %24 : vector<16x16xf32> to vector<16x16xbf16>
      %c0_14 = arith.constant 0 : index
      %c0_15 = arith.constant 0 : index
      %26 = vector.load %arg9[%c0_14, %c0_15] : memref<16x16xbf16, #tpu.memory_space<vmem>>, vector<16x16xbf16>
      tpu.vector_store %arg9[%c0_14, %c0_15], %25 {strides = array<i32>} : memref<16x16xbf16, #tpu.memory_space<vmem>>, vector<16x16xbf16>,
    } else {
    }
    %c32_i32 = arith.constant 32 : i32
    %7 = arith.muli %arg2, %c32_i32 : i32
    %8 = tpu.assume_multiple %7, 8 : i32
    %9 = arith.index_cast %8 : i32 to index
    %c0 = arith.constant 0 : index
    %10 = vector.load %arg6[%9, %c0] : memref<32x16xbf16, #tpu.memory_space<vmem>>, vector<32x16xbf16>
    %c0_1 = arith.constant 0 : index
    %c0_2 = arith.constant 0 : index
    %11 = vector.load %arg9[%c0_1, %c0_2] : memref<16x16xbf16, #tpu.memory_space<vmem>>, vector<16x16xbf16>
    %cst = arith.constant dense<0.000000e+00> : vector<32x16xf32>
    %12 = tpu.matmul %10, %11, %cst {dimension_numbers = #tpu.dot_dimension_numbers<[1], [0], [0], [1], [0, 0, 1, 1], [], []>} : vector<32x16xbf16>, vector<16x16xbf16>, vector<32x16xf32> -> vector<32x16xf32>
    %13 = arith.truncf %12 : vector<32x16xf32> to vector<32x16xbf16>
    %c0_3 = arith.constant 0 : index
    %c0_4 = arith.constant 0 : index
    %14 = vector.load %arg7[%c0_3, %c0_4] : memref<16x64xbf16, #tpu.memory_space<vmem>>, vector<16x64xbf16>
    %cst_5 = arith.constant dense<0.000000e+00> : vector<32x64xf32>
    %15 = tpu.matmul %13, %14, %cst_5 {dimension_numbers = #tpu.dot_dimension_numbers<[1], [0], [0], [1], [0, 0, 1, 1], [], []>} : vector<32x16xbf16>, vector<16x64xbf16>, vector<32x64xf32> -> vector<32x64xf32>
    %c0_6 = arith.constant 0 : index
    %c0_7 = arith.constant 0 : index
    %c0_8 = arith.constant 0 : index
    %c0_9 = arith.constant 0 : index
    %16 = vector.load %arg8[%c0_6, %c0_7, %c0_8, %c0_9] : memref<1x1x32x64xf32, #tpu.memory_space<vmem>>, vector<1x1x32x64xf32>
    %17 = vector.shape_cast %16 : vector<1x1x32x64xf32> to vector<32x64xf32>
    %18 = vector.shape_cast %15 : vector<32x64xf32> to vector<1x1x32x64xf32>
    tpu.vector_store %arg8[%c0_6, %c0_7, %c0_8, %c0_9], %18 {strides = array<i32>} : memref<1x1x32x64xf32, #tpu.memory_space<vmem>>, vector<1x1x32x64xf32>,
    return
  }
  func.func @transform_0(%arg0: i32, %arg1: i32, %arg2: i32) -> i32 {
    %c0_i32 = arith.constant 0 : i32
    %c0_i32_0 = arith.constant 0 : i32
    return %c0_i32 : i32
  }
  func.func @transform_1(%arg0: i32, %arg1: i32, %arg2: i32) -> i32 {
    %c0_i32 = arith.constant 0 : i32
    %c0_i32_0 = arith.constant 0 : i32
    return %c0_i32 : i32
  }
  func.func @transform_2(%arg0: i32, %arg1: i32, %arg2: i32) -> (i32, i32, i32, i32) {
    %c0_i32 = arith.constant 0 : i32
    %c0_i32_0 = arith.constant 0 : i32
    %c0_i32_1 = arith.constant 0 : i32
    return %arg0, %arg1, %c0_i32, %c0_i32_0 : i32, i32, i32, i32
  }
  func.func @transform_3(%arg0: i32, %arg1: i32, %arg2: i32) -> (i32, i32) {
    %c0_i32 = arith.constant 0 : i32
    %c0_i32_0 = arith.constant 0 : i32
    %c0_i32_1 = arith.constant 0 : i32
    return %c0_i32, %c0_i32_0 : i32, i32
  }
  func.func @transform_4(%arg0: i32, %arg1: i32, %arg2: i32) -> (i32, i32) {
    %c0_i32 = arith.constant 0 : i32
    %c0_i32_0 = arith.constant 0 : i32
    %c0_i32_1 = arith.constant 0 : i32
    return %c0_i32, %c0_i32_0 : i32, i32
  }
  func.func @transform_5(%arg0: i32, %arg1: i32, %arg2: i32) -> (i32, i32, i32, i32) {
    %c0_i32 = arith.constant 0 : i32
    %c0_i32_0 = arith.constant 0 : i32
    return %arg0, %arg1, %arg2, %c0_i32 : i32, i32, i32, i32
  }
}

</mosaic_0001>

<bundles_post_ra>
// kernel: tpu_custom_call.1
= control target key start
LH: loop header
LB: loop body
LE: loop exit
PB: predicated region body
PF: predicated region fallthrough
CT: control target
= control target key end

     0   :  { %s1139_s0 = inlined_call_operand.vmem [shape: f32[3], index: 0, kind: input, shape index: {}]   ;;  %s1140_s1 = inlined_call_operand.vmem [shape: f32[3], index: 1, kind: input, shape index: {}]   ;;  %s1141_s2 = inlined_call_operand.hbm [shape: f32[1,3,16,16], index: 2, kind: input, shape index: {}]   ;;  %s1142_s3 = inlined_call_operand.vmem [shape: bf16[32,16], index: 3, kind: input, shape index: {}]   ;;  %s1143_s4 = inlined_call_operand.vmem [shape: bf16[16,64], index: 4, kind: input, shape index: {}]   ;;  %s1144_s5 = inlined_call_operand.hbm [shape: f32[1,3,32,64], index: 5, kind: output, shape index: {}]  }
   0x1   :  { %1152 = sst [smem:[#allocation16_spill]] %s1139_s0 }
   0x2   :  { %1153 = sst [smem:[#allocation17_spill]] %s1140_s1 }
   0x3   :  { %10 = vsyncpa [#allocation6], 0 }
   0x4   :  { %11 = vsyncpa [#allocation8], 0 }
   0x5   :  { %12 = vsyncpa [#allocation4], 0 }
   0x6   :  { %14 = vsyncpa [#allocation4 + $0x1], 0 }
   0x7   :  { %15 = vsyncpa [#allocation5], 0 }
   0x8   :  { %17 = vsyncpa [#allocation5 + $0x1], 0  ;;  %s939_s18 = smov 0   ;;  %s941_s19 = smov 0  }
   0x9   :  { %s943_s20 = smov 0   ;;  %s945_s21 = smov 0  }
   0xa   :  { %s947_s22 = smov 0   ;;  %s949_s23 = smov 0  }
   0xb LB: > { %s611_s24 = sadd.s32 4294967295, %s899_s23   ;;  %s612_s25 = sadd.s32 4294967294, %s899_s23   ;;  %s899_s23 = sphi %s949_s23, %s23_s23   ;;  %s895_s22 = sphi %s947_s22, %s1176_s22   ;;  %s891_s21 = sphi %s945_s21, %s1175_s21   ;;  %s887_s20 = sphi %s943_s20, %s1174_s20   ;;  %s883_s19 = sphi %s941_s19, %s1173_s19   ;;  %s879_s18 = sphi %s939_s18, %s1172_s18  }
   0xc   : > { %s93_s26 = sadd.s32 1, %s887_s20  ;;  %p100_p0 = scmp.ne.s32.totalorder %s887_s20, %s883_s19 }
   0xd   : > { %p101_p1 = scmp.eq.s32.totalorder %s899_s23, 0  ;;  %p106_p2 = scmp.ne.s32.totalorder %s883_s19, %s879_s18 }
   0xe   : > { %p977_p3 = scmp.eq.s32.totalorder %s611_s24, 0  ;;  %p176_p4 = scmp.eq.s32.totalorder %s611_s24, 2 }
   0xf   : > { %p981_p5 = por %p101_p1, %p100_p0  ;;  %p182_p6 = scmp.eq.s32.totalorder %s612_s25, 2 }
  0x10   : > { %s1154_s27 = scalar_select %p977_p3, 1, 0 }
  0x11   : > { %p987_p7 = por %p977_p3, %p106_p2  ;;  %p991_p8 = por %p176_p4, %p100_p0 }
  0x12   : > { %p995_p9 = por %p182_p6, %p106_p2  ;;  %p613_p10 = scmp.ge.s32.totalorder %s899_s23, 1 }
  0x13   : > { %s1156_s29 = scalar_select %p987_p7, 1, 0 }
  0x14   : > { %s1157_s30 = scalar_select %p991_p8, 1, 0 }
  0x15   : > { %s1158_s6 = scalar_select %p995_p9, 1, 0 }
  0x16   : > { %p189_p11 = scmp.lt.s32.totalorder %s899_s23, 4  ;;  %s1160_s0 = sld [smem:[#allocation16_spill]] }
  0x17   : > { %1159 = sst [smem:[#allocation15_spill]] %s1158_s6  ;;  %p691_p13 = scmp.lt.s32.totalorder %s899_s23, 3 }
  0x18   : > { %p1004_p12 = pnand %p613_p10, %p189_p11  ;;  %s1162_s1 = sld [smem:[#allocation17_spill]] }
  0x19   : > { %p1016_p1 = pnand %p691_p13, %p981_p5 }
  0x1a   : > { %s1161_s10 = scalar_select %p1004_p12, 1, 0 }
  0x1b   : > { %p674_p0 = pneg %p1004_p12 }
  0x1c   : > { %s202_s9 = sshll.u32 %s1160_s0, 4  ;;  %s203_s9 = int_to_ptr.vmem [resolvable:$true] %s202_s9 }
  0x1d   : > { %s1163_s14 = scalar_select %p1016_p1, 1, 0 }
  0x1e   : > { %s213_s13 = sshll.u32 %s1162_s1, 4  ;;  %p1022_p2 = pnand %p674_p0, %p977_p3  ;;  %s214_s13 = int_to_ptr.vmem [resolvable:$true] %s213_s13 }
  0x1f   : > { %s753_s16 = scalar_lea.vmem %s203_s9, 16  ;;  %p761_p9 = scmp.lt.s32.totalorder %s203_s9, %s203_s9 }
  0x20   : > { %p754_p4 = scmp.ne.s32.totalorder %s203_s9, %s753_s16  ;;  %p755_p6 = pneg %p1022_p2 }
  0x21   : > { %p762_p8 = scmp.lt.s32.totalorder %s753_s16, %s753_s16 }
  0x22   : > { %p756_p10 = pnand %p755_p6, %p754_p4 }
  0x23   : > { %p763_p7 = por %p762_p8, %p761_p9 }
  0x24   : > { %p757_p11 = pneg %p756_p10 }
  0x26   : > { %p764_p5 = pnand %p763_p7, %p757_p11 }
  0x28   : > { %767 = shalt.err (!%p764_p5)
}
  0x29   : > { %s901_s17 = smov [#allocation3]   ;;  %s768_s24 = scalar_lea.vmem %s214_s13, 16 }
  0x2a   : > { %677 = dma.vmem_to_smem (!%p1022_p2), %s203_s9, 16, %s901_s17, [#allocation6]  }
  0x2b   : > { %p769_p13 = scmp.ne.s32.totalorder %s214_s13, %s768_s24  ;;  %p776_p12 = scmp.lt.s32.totalorder %s214_s13, %s214_s13 }
  0x2c   : > { %p777_p1 = scmp.lt.s32.totalorder %s768_s24, %s768_s24 }
  0x2d   : > { %p771_p0 = pnand %p769_p13, %p755_p6 }
  0x2e   : > { %p778_p4 = por %p777_p1, %p776_p12 }
  0x2f   : > { %p772_p3 = pneg %p771_p0 }
  0x31   : > { %p779_p10 = pnand %p778_p4, %p772_p3 }
  0x33   : > { %782 = shalt.err (!%p779_p10)
}
  0x34   : > { %s902_s25 = smov [#allocation7]   ;;  %s38_s28 = sadd.s32 1, %s895_s22 }
  0x35   : > { %680 = dma.vmem_to_smem (!%p1022_p2), %s214_s13, 16, %s902_s25, [#allocation8]  }
  0x36   : > { %s230_s7 = sand.u32 1, %s887_s20   ;;  %p40_p7 = scmp.ge.s32.totalorder %s38_s28, 3 }
  0x37   : > { %s617_s8 = sshll.u32 %s230_s7, 4  ;;  %s640_s9 = sshll.u32 %s895_s22, 8 }
  0x38   : > { %s1178_s28 = smov (%p40_p7, %s38_s28), 0  ;;  %s242_s15 = scalar_lea.hbm %s1141_s2, %s640_s9 }
  0x39   : > { %s89_s16 = ssub.s32 %s895_s22, %s1178_s28  ;;  %s234_s17 = scalar_lea.vmem [#allocation9], %s617_s8 }
  0x3a   : > { %s243_s24 = sshll.u32 %s234_s17, 4  ;;  %p91_p3 = scmp.eq.s32.totalorder %s89_s16, 0  ;;  %s244_s24 = int_to_ptr.vmem [resolvable:$true] %s243_s24 }
  0x3b   : > { %s231_s13 = scalar_lea.sflag [#allocation4], %s230_s7  ;;  %p1165_p8 = scmp.ne.s32.totalorder %s1163_s14, 0 }
  0x3c   : > { %s1045_s0 = scalar_select %p91_p3, %s887_s20, %s93_s26  }
  0x3d   : > { %p785_p9 = pneg %p1165_p8  ;;  %s796_s25 = scalar_lea.vmem %s244_s24, 256 }
  0x3e   : > { %p797_p12 = scmp.ne.s32.totalorder %s244_s24, %s796_s25  ;;  %s903_s1 = smov [#allocation9]  }
  0x3f   : > { %s801_s6 = sshll.u32 %s903_s1, 4  ;;  %s802_s6 = int_to_ptr.vmem [resolvable:$false] %s801_s6 }
  0x40   : > { %p799_p1 = pnand %p797_p12, %p785_p9  ;;  %s803_s11 = scalar_lea.vmem %s802_s6, 512 }
  0x41   : > { %p804_p6 = scmp.lt.s32.totalorder %s244_s24, %s802_s6  ;;  %p805_p11 = scmp.lt.s32.totalorder %s803_s11, %s796_s25 }
  0x42   : > { %p800_p2 = pneg %p799_p1 }
  0x43   : > { %p806_p5 = por %p805_p11, %p804_p6 }
  0x45   : > { %p807_p13 = pnand %p806_p5, %p800_p2 }
  0x47   : > { %810 = shalt.err (!%p807_p13)
}
  0x48   : > { %s904_s8 = smov 128   ;;  %s905_s26 = smov 8  }
  0x49   : > { %684 = dma.hbm_to_vmem [thread:$0]  (!%p1165_p8), %s242_s15, 256, %s244_s24, %s231_s13, %s904_s8, %s904_s8, %s905_s26  }
  0x4a   : > { %p1166_p0 = scmp.ne.s32.totalorder %s1161_s10, 0 }
  0x4b   : > { %p1167_p4 = scmp.ne.s32.totalorder (!%p1166_p0), %s1154_s27, 0 }
  0x4c   : > { %255 = sbr.rel (%p1166_p0) target bundleno = 530 (0x212), region = 40 }
  0x51   : > { %862 = dma.done.wait (%p1167_p4), [#allocation6], 16  }
  0x52   : > { %864 = vsyncadd (%p1167_p4), [#allocation6], 4294967280 }
  0x53   : > { %866 = dma.done.wait (%p1167_p4), [#allocation8], 16  }
  0x54   : > { %868 = vsyncadd (%p1167_p4), [#allocation8], 4294967280  ;;  %s1062_s1 = sand.u32 1, %s883_s19   ;;  %p1168_p10 = scmp.ne.s32.totalorder %s1156_s29, 0 }
  0x55   : > { %s623_s6 = sshll.u32 %s1062_s1, 4  ;;  %s266_s10 = scalar_lea.sflag [#allocation4], %s1062_s1 }
  0x56   : > { %s269_s14 = scalar_lea.vmem [#allocation9], %s623_s6 }
  0x57   : > { %870 = dma.done.wait (%p1168_p10), %s266_s10, 256  }
  0x58   : > { %872 = vsyncadd (%p1168_p10), %s266_s10, 4294967040 }
  0x59   : > { %274 = sfence }
  0x5a   : > { %s299_s7 = sld [smem:[#allocation3 + %s891_s21]]  ;;  %v750_v0 = vld [vmem:[%s1142_s3] sm:$0xff]   ;;  %vm351_vm0 = vcmask 130048   ;;  %v305_v1 = vld [vmem:[%s269_s14] sm:$0xff]  ;;  %vm321_vm1 = vcmask 125952   ;;  %s624_s24 = sshll.u32 %s1062_s1, 5 }
  0x5b   : > { %s300_s27 = sld [smem:[#allocation7 + %s891_s21]]  ;;  %652 = vmatprep.mubr.msk.bf16.mxu0 %vm351_vm0, %v750_v0  ;;  %v306_v2 = vld [vmem:[%s269_s14 + $0x8] sm:$0xff]  ;;  %v751_v12 = vld [vmem:[%s1142_s3 + $0x8] sm:$0xff]   ;;  %vm472_vm2 = vcmask 523264   ;;  %s296_s13 = scalar_lea.vmem [#allocation10], %s624_s24 }
  0x5c   : > { %v752_v13 = vld [vmem:[%s1143_s4] sm:$0xff]   ;;  %s495_s25 = sshll.u32 %s296_s13, 4  ;;  %s643_s11 = sshll.u32 %s891_s21, 9  ;;  %s1087_s25 = int_to_ptr.vmem [resolvable:$true] %s495_s25 }
  0x5d   : > { %656 = vmatprep.subr.bf16.mxu1 %v752_v13  ;;  %s1092_s6 = scalar_lea.hbm %s1144_s5, %s643_s11  ;;  %s478_s10 = scalar_lea.sflag [#allocation5], %s1062_s1 }
  0x5e   : > { %657 = vmatpush3.bf16.msra.mxu1 %v752_v13  ;;  %s811_s14 = scalar_lea.vmem %s1087_s25, 512  ;;  %p1169_p3 = scmp.ne.s32.totalorder %s1157_s30, 0 }
  0x5f   : > { %p812_p7 = scmp.ne.s32.totalorder %s1087_s25, %s811_s14  ;;  %s906_s21 = smov [#allocation10]  }
  0x60   : > { %v307_v3 = vstv %s299_s7  ;;  %s815_s7 = sshll.u32 %s906_s21, 4  ;;  %s816_s7 = int_to_ptr.vmem [resolvable:$false] %s815_s7 }
  0x61   : > { %v308_v4 = vsub.f32 %v305_v1, %v307_v3  ;;  %v309_v5 = vsub.f32 %v306_v2, %v307_v3  ;;  %v310_v6 = vstv %s300_s27  ;;  %p813_p8 = pnand %p812_p7, %p1169_p3  ;;  %s817_s27 = scalar_lea.vmem %s816_s7, 1024 }
  0x62   : > { %p818_p12 = scmp.lt.s32.totalorder %s1087_s25, %s816_s7  ;;  %p819_p1 = scmp.lt.s32.totalorder %s817_s27, %s811_s14 }
  0x63   : > { %v311_v7 = vmul.f32 %v310_v6, %v308_v4  ;;  %v312_v8 = vmul.f32 %v310_v6, %v309_v5  ;;  %p814_p9 = pneg %p813_p8 }
  0x64   : > { %p820_p2 = por %p819_p1, %p818_p12 }
  0x65   : > { %v641_v9 = vpack.c.bf16 %v311_v7, %v311_v7  ;;  %v642_v10 = vpack.c.bf16 %v312_v8, %v312_v8 }
  0x66   : > { %p821_p6 = pnand %p820_p2, %p814_p9 }
  0x67   : > { %322 = vst.msk [vmem:[#allocation2] sm:$0xf] %vm321_vm1, %v641_v9  ;;  %323 = vst.msk [vmem:[#allocation2 + $0x4] sm:$0xf] %vm321_vm1, %v642_v10 }
  0x6e   : > { %v749_v11 = vld [vmem:[#allocation2] sm:$0xff]  }
  0x6f   : > { %650 = vmatprep.subr.bf16.mxu0 %v749_v11 }
  0x70   : > { %651 = vmatpush3.bf16.msra.mxu0 %v749_v11 }
  0x73   : > { %653 = vmatmul.mubr.msk.bf16.vlgmr.msra.gmra.mxu0 %vm351_vm0, %v751_v12 }
 0x133   : > { %v654_v14 = vpop.f32.mrf.mxu0 }
 0x135   : > { %v392_v15 = vpop.f32.mrf.mxu0 }
 0x137   : > { %v655_v16 = vpop.f32.mrf.mxu0 }
 0x138   : > { %v408_v19 = vpack.c.bf16 %v655_v16, %v654_v14 }
 0x139   : > { %v395_v17 = vpop.f32.mrf.mxu0 }
 0x13a   : > { %v407_v18 = vpack.c.bf16 %v395_v17, %v392_v15 }
 0x13c   : > { %658 = vmatprep.mubr.msk.bf16.mxu1 %vm351_vm0, %v407_v18 }
 0x13d   : > { %659 = vmatmul.mubr.msk.bf16.vlgmr.msra.gmra.mxu1 %vm351_vm0, %v408_v19 }
 0x1fd   : > { %v660_v20 = vpop.f32.mrf.mxu1 }
 0x1fe   : > { %475 = vst.msk [vmem:[%s296_s13 + $0x10] sm:$0xff] %vm472_vm2, %v660_v20 }
 0x1ff   : > { %v457_v21 = vpop.f32.mrf.mxu1 }
 0x200   : > { %473 = vst.msk [vmem:[%s296_s13] sm:$0xff] %vm472_vm2, %v457_v21 }
 0x201   : > { %v661_v22 = vpop.f32.mrf.mxu1 }
 0x202   : > { %476 = vst.msk [vmem:[%s296_s13 + $0x18] sm:$0xff] %vm472_vm2, %v661_v22 }
 0x203   : > { %v460_v23 = vpop.f32.mrf.mxu1 }
 0x204   : > { %474 = vst.msk [vmem:[%s296_s13 + $0x8] sm:$0xff] %vm472_vm2, %v460_v23 }
 0x205   : > { %824 = shalt.err (!%p821_p6)
}
 0x206   : > { %s825_s9 = scalar_lea.hbm %s1092_s6, 512  ;;  %s829_s15 = scalar_lea.hbm %s1144_s5, 1536 }
 0x207   : > { %p826_p11 = scmp.ne.s32.totalorder %s1092_s6, %s825_s9  ;;  %p830_p0 = scmp.lt.s32.totalorder %s1092_s6, %s1144_s5 }
 0x208   : > { %p831_p4 = scmp.lt.s32.totalorder %s829_s15, %s825_s9 }
 0x209   : > { %p827_p5 = pnand %p826_p11, %p1169_p3 }
 0x20a   : > { %p832_p10 = por %p831_p4, %p830_p0 }
 0x20b   : > { %p828_p13 = pneg %p827_p5 }
 0x20d   : > { %p833_p7 = pnand %p832_p10, %p828_p13 }
 0x20f   : > { %836 = shalt.err (!%p833_p7)
}
 0x210   : > { %s907_s24 = smov 128   ;;  %s908_s13 = smov 8  }
 0x211   : > { %672 = dma.vmem_to_hbm [thread:$0]  (%p1169_p3), %s1087_s25, 512, %s1092_s6, %s478_s10, %s907_s24, %s907_s24, %s908_s13  }
 0x212 PF: > { %s1170_s11 = sld [smem:[#allocation15_spill]]  ;;  %p694_p8 = scmp.ge.s32.totalorder %s899_s23, 2 }
 0x213   : > { %s510_s8 = sand.u32 1, %s879_s18  }
 0x214   : > { %s511_s26 = scalar_lea.sflag [#allocation5], %s510_s8 }
 0x218   : > { %p1171_p9 = scmp.ne.s32.totalorder %s1170_s11, 0 }
 0x21a   : > { %p686_p12 = pnand %p694_p8, %p1171_p9 }
 0x21c   : > { %p687_p1 = pneg %p686_p12 }
 0x21e   : > { %874 = dma.done.wait (%p687_p1), %s511_s26, 512  }
 0x21f   : > { %876 = vsyncadd (%p687_p1), %s511_s26, 4294966784  ;;  %s23_s23 = sadd.s32 1, %s899_s23   ;;  %s1172_s18 = smov %s883_s19 }
 0x220   : > { %p20_p2 = scmp.ge.s32.totalorder %s23_s23, 5   ;;  %s1173_s19 = smov %s887_s20 }
 0x221   : > { %s1174_s20 = smov %s1045_s0  ;;  %s1175_s21 = smov %s895_s22 }
 0x222   : > { %s1176_s22 = smov %s1178_s28  ;;  %22 = sbr.rel (!%p20_p2) target bundleno = 11 (0xb), region = 99 }
 0x227   :  { %516 = vsyncpa [#allocation4], 1 }
 0x228   :  { %518 = vsyncpa [#allocation4 + $0x1], 1 }
 0x229   :  { %519 = vsyncpa [#allocation5], 1 }
 0x22a   :  { %521 = vsyncpa [#allocation5 + $0x1], 1 }
 0x22b   :  { %522 = vsyncpa [#allocation6], 1 }
 0x22c   :  { %524 = vsyncpa [#allocation6 + $0x1], 1 }
 0x22d   :  { %525 = vsyncpa [#allocation8], 1 }

// kernel: tpu_custom_call.1
= control target key start
LH: loop header
LB: loop body
LE: loop exit
PB: predicated region body
PF: predicated region fallthrough
CT: control target
= control target key end

     0   :  { %s1139_s0 = inlined_call_operand.vmem [shape: f32[3], index: 0, kind: input, shape index: {}]   ;;  %s1140_s1 = inlined_call_operand.vmem [shape: f32[3], index: 1, kind: input, shape index: {}]   ;;  %s1141_s2 = inlined_call_operand.hbm [shape: f32[1,3,16,16], index: 2, kind: input, shape index: {}]   ;;  %s1142_s3 = inlined_call_operand.vmem [shape: bf16[32,16], index: 3, kind: input, shape index: {}]   ;;  %s1143_s4 = inlined_call_operand.vmem [shape: bf16[16,64], index: 4, kind: input, shape index: {}]   ;;  %s1144_s5 = inlined_call_operand.hbm [shape: f32[1,3,32,64], index: 5, kind: output, shape index: {}]  }
   0x1   :  { %1152 = sst [smem:[#allocation16_spill]] %s1139_s0 }
   0x2   :  { %1153 = sst [smem:[#allocation17_spill]] %s1140_s1 }
   0x3   :  { %10 = vsyncpa [#allocation6], 0 }
   0x4   :  { %11 = vsyncpa [#allocation8], 0 }
   0x5   :  { %12 = vsyncpa [#allocation4], 0 }
   0x6   :  { %14 = vsyncpa [#allocation4 + $0x1], 0 }
   0x7   :  { %15 = vsyncpa [#allocation5], 0 }
   0x8   :  { %17 = vsyncpa [#allocation5 + $0x1], 0  ;;  %s939_s18 = smov 0   ;;  %s941_s19 = smov 0  }
   0x9   :  { %s943_s20 = smov 0   ;;  %s945_s21 = smov 0  }
   0xa   :  { %s947_s22 = smov 0   ;;  %s949_s23 = smov 0  }
   0xb LB: > { %s611_s24 = sadd.s32 4294967295, %s899_s23   ;;  %s612_s25 = sadd.s32 4294967294, %s899_s23   ;;  %s899_s23 = sphi %s949_s23, %s23_s23   ;;  %s895_s22 = sphi %s947_s22, %s1176_s22   ;;  %s891_s21 = sphi %s945_s21, %s1175_s21   ;;  %s887_s20 = sphi %s943_s20, %s1174_s20   ;;  %s883_s19 = sphi %s941_s19, %s1173_s19   ;;  %s879_s18 = sphi %s939_s18, %s1172_s18  }
   0xc   : > { %s93_s26 = sadd.s32 1, %s887_s20  ;;  %p100_p0 = scmp.ne.s32.totalorder %s887_s20, %s883_s19 }
   0xd   : > { %p101_p1 = scmp.eq.s32.totalorder %s899_s23, 0  ;;  %p106_p2 = scmp.ne.s32.totalorder %s883_s19, %s879_s18 }
   0xe   : > { %p977_p3 = scmp.eq.s32.totalorder %s611_s24, 0  ;;  %p176_p4 = scmp.eq.s32.totalorder %s611_s24, 2 }
   0xf   : > { %p981_p5 = por %p101_p1, %p100_p0  ;;  %p182_p6 = scmp.eq.s32.totalorder %s612_s25, 2 }
  0x10   : > { %s1154_s27 = scalar_select %p977_p3, 1, 0 }
  0x11   : > { %p987_p7 = por %p977_p3, %p106_p2  ;;  %p991_p8 = por %p176_p4, %p100_p0 }
  0x12   : > { %p995_p9 = por %p182_p6, %p106_p2  ;;  %p613_p10 = scmp.ge.s32.totalorder %s899_s23, 1 }
  0x13   : > { %s1156_s29 = scalar_select %p987_p7, 1, 0 }
  0x14   : > { %s1157_s30 = scalar_select %p991_p8, 1, 0 }
  0x15   : > { %s1158_s6 = scalar_select %p995_p9, 1, 0 }
  0x16   : > { %p189_p11 = scmp.lt.s32.totalorder %s899_s23, 4  ;;  %s1160_s0 = sld [smem:[#allocation16_spill]] }
  0x17   : > { %1159 = sst [smem:[#allocation15_spill]] %s1158_s6  ;;  %p691_p13 = scmp.lt.s32.totalorder %s899_s23, 3 }
  0x18   : > { %p1004_p12 = pnand %p613_p10, %p189_p11  ;;  %s1162_s1 = sld [smem:[#allocation17_spill]] }
  0x19   : > { %p1016_p1 = pnand %p691_p13, %p981_p5 }
  0x1a   : > { %s1161_s10 = scalar_select %p1004_p12, 1, 0 }
  0x1b   : > { %p674_p0 = pneg %p1004_p12 }
  0x1c   : > { %s202_s9 = sshll.u32 %s1160_s0, 4  ;;  %s203_s9 = int_to_ptr.vmem [resolvable:$true] %s202_s9 }
  0x1d   : > { %s1163_s14 = scalar_select %p1016_p1, 1, 0 }
  0x1e   : > { %s213_s13 = sshll.u32 %s1162_s1, 4  ;;  %p1022_p2 = pnand %p674_p0, %p977_p3  ;;  %s214_s13 = int_to_ptr.vmem [resolvable:$true] %s213_s13 }
  0x1f   : > { %s753_s16 = scalar_lea.vmem %s203_s9, 16  ;;  %p761_p9 = scmp.lt.s32.totalorder %s203_s9, %s203_s9 }
  0x20   : > { %p754_p4 = scmp.ne.s32.totalorder %s203_s9, %s753_s16  ;;  %p755_p6 = pneg %p1022_p2 }
  0x21   : > { %p762_p8 = scmp.lt.s32.totalorder %s753_s16, %s753_s16 }
  0x22   : > { %p756_p10 = pnand %p755_p6, %p754_p4 }
  0x23   : > { %p763_p7 = por %p762_p8, %p761_p9 }
  0x24   : > { %p757_p11 = pneg %p756_p10 }
  0x26   : > { %p764_p5 = pnand %p763_p7, %p757_p11 }
  0x28   : > { %767 = shalt.err (!%p764_p5)
}
  0x29   : > { %s901_s17 = smov [#allocation3]   ;;  %s768_s24 = scalar_lea.vmem %s214_s13, 16 }
  0x2a   : > { %677 = dma.vmem_to_smem (!%p1022_p2), %s203_s9, 16, %s901_s17, [#allocation6]  }
  0x2b   : > { %p769_p13 = scmp.ne.s32.totalorder %s214_s13, %s768_s24  ;;  %p776_p12 = scmp.lt.s32.totalorder %s214_s13, %s214_s13 }
  0x2c   : > { %p777_p1 = scmp.lt.s32.totalorder %s768_s24, %s768_s24 }
  0x2d   : > { %p771_p0 = pnand %p769_p13, %p755_p6 }
  0x2e   : > { %p778_p4 = por %p777_p1, %p776_p12 }
  0x2f   : > { %p772_p3 = pneg %p771_p0 }
  0x31   : > { %p779_p10 = pnand %p778_p4, %p772_p3 }
  0x33   : > { %782 = shalt.err (!%p779_p10)
}
  0x34   : > { %s902_s25 = smov [#allocation7]   ;;  %s38_s28 = sadd.s32 1, %s895_s22 }
  0x35   : > { %680 = dma.vmem_to_smem (!%p1022_p2), %s214_s13, 16, %s902_s25, [#allocation8]  }
  0x36   : > { %s230_s7 = sand.u32 1, %s887_s20   ;;  %p40_p7 = scmp.ge.s32.totalorder %s38_s28, 3 }
  0x37   : > { %s617_s8 = sshll.u32 %s230_s7, 4  ;;  %s640_s9 = sshll.u32 %s895_s22, 8 }
  0x38   : > { %s1178_s28 = smov (%p40_p7, %s38_s28), 0  ;;  %s242_s15 = scalar_lea.hbm %s1141_s2, %s640_s9 }
  0x39   : > { %s89_s16 = ssub.s32 %s895_s22, %s1178_s28  ;;  %s234_s17 = scalar_lea.vmem [#allocation9], %s617_s8 }
  0x3a   : > { %s243_s24 = sshll.u32 %s234_s17, 4  ;;  %p91_p3 = scmp.eq.s32.totalorder %s89_s16, 0  ;;  %s244_s24 = int_to_ptr.vmem [resolvable:$true] %s243_s24 }
  0x3b   : > { %s231_s13 = scalar_lea.sflag [#allocation4], %s230_s7  ;;  %p1165_p8 = scmp.ne.s32.totalorder %s1163_s14, 0 }
  0x3c   : > { %s1045_s0 = scalar_select %p91_p3, %s887_s20, %s93_s26  }
  0x3d   : > { %p785_p9 = pneg %p1165_p8  ;;  %s796_s25 = scalar_lea.vmem %s244_s24, 256 }
  0x3e   : > { %p797_p12 = scmp.ne.s32.totalorder %s244_s24, %s796_s25  ;;  %s903_s1 = smov [#allocation9]  }
  0x3f   : > { %s801_s6 = sshll.u32 %s903_s1, 4  ;;  %s802_s6 = int_to_ptr.vmem [resolvable:$false] %s801_s6 }
  0x40   : > { %p799_p1 = pnand %p797_p12, %p785_p9  ;;  %s803_s11 = scalar_lea.vmem %s802_s6, 512 }
  0x41   : > { %p804_p6 = scmp.lt.s32.totalorder %s244_s24, %s802_s6  ;;  %p805_p11 = scmp.lt.s32.totalorder %s803_s11, %s796_s25 }
  0x42   : > { %p800_p2 = pneg %p799_p1 }
  0x43   : > { %p806_p5 = por %p805_p11, %p804_p6 }
  0x45   : > { %p807_p13 = pnand %p806_p5, %p800_p2 }
  0x47   : > { %810 = shalt.err (!%p807_p13)
}
  0x48   : > { %s904_s8 = smov 128   ;;  %s905_s26 = smov 8  }
  0x49   : > { %684 = dma.hbm_to_vmem [thread:$0]  (!%p1165_p8), %s242_s15, 256, %s244_s24, %s231_s13, %s904_s8, %s904_s8, %s905_s26  }
  0x4a   : > { %p1166_p0 = scmp.ne.s32.totalorder %s1161_s10, 0 }
  0x4b   : > { %p1167_p4 = scmp.ne.s32.totalorder (!%p1166_p0), %s1154_s27, 0 }
  0x4c   : > { %255 = sbr.rel (%p1166_p0) target bundleno = 530 (0x212), region = 40 }
  0x51   : > { %862 = dma.done.wait (%p1167_p4), [#allocation6], 16  }
  0x52   : > { %864 = vsyncadd (%p1167_p4), [#allocation6], 4294967280 }
  0x53   : > { %866 = dma.done.wait (%p1167_p4), [#allocation8], 16  }
  0x54   : > { %868 = vsyncadd (%p1167_p4), [#allocation8], 4294967280  ;;  %s1062_s1 = sand.u32 1, %s883_s19   ;;  %p1168_p10 = scmp.ne.s32.totalorder %s1156_s29, 0 }
  0x55   : > { %s623_s6 = sshll.u32 %s1062_s1, 4  ;;  %s266_s10 = scalar_lea.sflag [#allocation4], %s1062_s1 }
  0x56   : > { %s269_s14 = scalar_lea.vmem [#allocation9], %s623_s6 }
  0x57   : > { %870 = dma.done.wait (%p1168_p10), %s266_s10, 256  }
  0x58   : > { %872 = vsyncadd (%p1168_p10), %s266_s10, 4294967040 }
  0x59   : > { %274 = sfence }
  0x5a   : > { %s299_s7 = sld [smem:[#allocation3 + %s891_s21]]  ;;  %v750_v0 = vld [vmem:[%s1142_s3] sm:$0xff]   ;;  %vm351_vm0 = vcmask 130048   ;;  %v305_v1 = vld [vmem:[%s269_s14] sm:$0xff]  ;;  %vm321_vm1 = vcmask 125952   ;;  %s624_s24 = sshll.u32 %s1062_s1, 5 }
  0x5b   : > { %s300_s27 = sld [smem:[#allocation7 + %s891_s21]]  ;;  %652 = vmatprep.mubr.msk.bf16.mxu0 %vm351_vm0, %v750_v0  ;;  %v306_v2 = vld [vmem:[%s269_s14 + $0x8] sm:$0xff]  ;;  %v751_v12 = vld [vmem:[%s1142_s3 + $0x8] sm:$0xff]   ;;  %vm472_vm2 = vcmask 523264   ;;  %s296_s13 = scalar_lea.vmem [#allocation10], %s624_s24 }
  0x5c   : > { %v752_v13 = vld [vmem:[%s1143_s4] sm:$0xff]   ;;  %s495_s25 = sshll.u32 %s296_s13, 4  ;;  %s643_s11 = sshll.u32 %s891_s21, 9  ;;  %s1087_s25 = int_to_ptr.vmem [resolvable:$true] %s495_s25 }
  0x5d   : > { %656 = vmatprep.subr.bf16.mxu1 %v752_v13  ;;  %s1092_s6 = scalar_lea.hbm %s1144_s5, %s643_s11  ;;  %s478_s10 = scalar_lea.sflag [#allocation5], %s1062_s1 }
  0x5e   : > { %657 = vmatpush3.bf16.msra.mxu1 %v752_v13  ;;  %s811_s14 = scalar_lea.vmem %s1087_s25, 512  ;;  %p1169_p3 = scmp.ne.s32.totalorder %s1157_s30, 0 }
  0x5f   : > { %p812_p7 = scmp.ne.s32.totalorder %s1087_s25, %s811_s14  ;;  %s906_s21 = smov [#allocation10]  }
  0x60   : > { %v307_v3 = vstv %s299_s7  ;;  %s815_s7 = sshll.u32 %s906_s21, 4  ;;  %s816_s7 = int_to_ptr.vmem [resolvable:$false] %s815_s7 }
  0x61   : > { %v308_v4 = vsub.f32 %v305_v1, %v307_v3  ;;  %v309_v5 = vsub.f32 %v306_v2, %v307_v3  ;;  %v310_v6 = vstv %s300_s27  ;;  %p813_p8 = pnand %p812_p7, %p1169_p3  ;;  %s817_s27 = scalar_lea.vmem %s816_s7, 1024 }
  0x62   : > { %p818_p12 = scmp.lt.s32.totalorder %s1087_s25, %s816_s7  ;;  %p819_p1 = scmp.lt.s32.totalorder %s817_s27, %s811_s14 }
  0x63   : > { %v311_v7 = vmul.f32 %v310_v6, %v308_v4  ;;  %v312_v8 = vmul.f32 %v310_v6, %v309_v5  ;;  %p814_p9 = pneg %p813_p8 }
  0x64   : > { %p820_p2 = por %p819_p1, %p818_p12 }
  0x65   : > { %v641_v9 = vpack.c.bf16 %v311_v7, %v311_v7  ;;  %v642_v10 = vpack.c.bf16 %v312_v8, %v312_v8 }
  0x66   : > { %p821_p6 = pnand %p820_p2, %p814_p9 }
  0x67   : > { %322 = vst.msk [vmem:[#allocation2] sm:$0xf] %vm321_vm1, %v641_v9  ;;  %323 = vst.msk [vmem:[#allocation2 + $0x4] sm:$0xf] %vm321_vm1, %v642_v10 }
  0x6e   : > { %v749_v11 = vld [vmem:[#allocation2] sm:$0xff]  }
  0x6f   : > { %650 = vmatprep.subr.bf16.mxu0 %v749_v11 }
  0x70   : > { %651 = vmatpush3.bf16.msra.mxu0 %v749_v11 }
  0x73   : > { %653 = vmatmul.mubr.msk.bf16.vlgmr.msra.gmra.mxu0 %vm351_vm0, %v751_v12 }
 0x133   : > { %v654_v14 = vpop.f32.mrf.mxu0 }
 0x135   : > { %v392_v15 = vpop.f32.mrf.mxu0 }
 0x137   : > { %v655_v16 = vpop.f32.mrf.mxu0 }
 0x138   : > { %v408_v19 = vpack.c.bf16 %v655_v16, %v654_v14 }
 0x139   : > { %v395_v17 = vpop.f32.mrf.mxu0 }
 0x13a   : > { %v407_v18 = vpack.c.bf16 %v395_v17, %v392_v15 }
 0x13c   : > { %658 = vmatprep.mubr.msk.bf16.mxu1 %vm351_vm0, %v407_v18 }
 0x13d   : > { %659 = vmatmul.mubr.msk.bf16.vlgmr.msra.gmra.mxu1 %vm351_vm0, %v408_v19 }
 0x1fd   : > { %v660_v20 = vpop.f32.mrf.mxu1 }
 0x1fe   : > { %475 = vst.msk [vmem:[%s296_s13 + $0x10] sm:$0xff] %vm472_vm2, %v660_v20 }
 0x1ff   : > { %v457_v21 = vpop.f32.mrf.mxu1 }
 0x200   : > { %473 = vst.msk [vmem:[%s296_s13] sm:$0xff] %vm472_vm2, %v457_v21 }
 0x201   : > { %v661_v22 = vpop.f32.mrf.mxu1 }
 0x202   : > { %476 = vst.msk [vmem:[%s296_s13 + $0x18] sm:$0xff] %vm472_vm2, %v661_v22 }
 0x203   : > { %v460_v23 = vpop.f32.mrf.mxu1 }
 0x204   : > { %474 = vst.msk [vmem:[%s296_s13 + $0x8] sm:$0xff] %vm472_vm2, %v460_v23 }
 0x205   : > { %824 = shalt.err (!%p821_p6)
}
 0x206   : > { %s825_s9 = scalar_lea.hbm %s1092_s6, 512  ;;  %s829_s15 = scalar_lea.hbm %s1144_s5, 1536 }
 0x207   : > { %p826_p11 = scmp.ne.s32.totalorder %s1092_s6, %s825_s9  ;;  %p830_p0 = scmp.lt.s32.totalorder %s1092_s6, %s1144_s5 }
 0x208   : > { %p831_p4 = scmp.lt.s32.totalorder %s829_s15, %s825_s9 }
 0x209   : > { %p827_p5 = pnand %p826_p11, %p1169_p3 }
 0x20a   : > { %p832_p10 = por %p831_p4, %p830_p0 }
 0x20b   : > { %p828_p13 = pneg %p827_p5 }
 0x20d   : > { %p833_p7 = pnand %p832_p10, %p828_p13 }
 0x20f   : > { %836 = shalt.err (!%p833_p7)
}
 0x210   : > { %s907_s24 = smov 128   ;;  %s908_s13 = smov 8  }
 0x211   : > { %672 = dma.vmem_to_hbm [thread:$0]  (%p1169_p3), %s1087_s25, 512, %s1092_s6, %s478_s10, %s907_s24, %s907_s24, %s908_s13  }
 0x212 PF: > { %s1170_s11 = sld [smem:[#allocation15_spill]]  ;;  %p694_p8 = scmp.ge.s32.totalorder %s899_s23, 2 }
 0x213   : > { %s510_s8 = sand.u32 1, %s879_s18  }
 0x214   : > { %s511_s26 = scalar_lea.sflag [#allocation5], %s510_s8 }
 0x218   : > { %p1171_p9 = scmp.ne.s32.totalorder %s1170_s11, 0 }
 0x21a   : > { %p686_p12 = pnand %p694_p8, %p1171_p9 }
 0x21c   : > { %p687_p1 = pneg %p686_p12 }
 0x21e   : > { %874 = dma.done.wait (%p687_p1), %s511_s26, 512  }
 0x21f   : > { %876 = vsyncadd (%p687_p1), %s511_s26, 4294966784  ;;  %s23_s23 = sadd.s32 1, %s899_s23   ;;  %s1172_s18 = smov %s883_s19 }
 0x220   : > { %p20_p2 = scmp.ge.s32.totalorder %s23_s23, 5   ;;  %s1173_s19 = smov %s887_s20 }
 0x221   : > { %s1174_s20 = smov %s1045_s0  ;;  %s1175_s21 = smov %s895_s22 }
 0x222   : > { %s1176_s22 = smov %s1178_s28  ;;  %22 = sbr.rel (!%p20_p2) target bundleno = 11 (0xb), region = 99 }
 0x227   :  { %516 = vsyncpa [#allocation4], 1 }
 0x228   :  { %518 = vsyncpa [#allocation4 + $0x1], 1 }
 0x229   :  { %519 = vsyncpa [#allocation5], 1 }
 0x22a   :  { %521 = vsyncpa [#allocation5 + $0x1], 1 }
 0x22b   :  { %522 = vsyncpa [#allocation6], 1 }
 0x22c   :  { %524 = vsyncpa [#allocation6 + $0x1], 1 }
 0x22d   :  { %525 = vsyncpa [#allocation8], 1 }

</bundles_post_ra>
